<compile_context>
chip_gen: v5e
topology: v5e:2x2
jax: 0.10.0
libtpu: 0.0.40
codegen_flags: <defaults>
</compile_context>

<pallas_src>
import functools

import jax
import jax.numpy as jnp
from jax import lax
from jax.experimental import pallas as pl
from jax.experimental.pallas import tpu as pltpu


def attn_dropout_kernel(scale_ref, p_ref, q_ref, k_ref, v_ref, mask_ref, o_ref):
    # Squeeze the singleton batch dim at the Ref level (no data movement).
    q = q_ref[0]          # (S, D) f32
    k = k_ref[0]          # (S, D) f32
    v = v_ref[0]          # (S, D) f32
    keep = mask_ref[...]  # (S, S) f32, 0.0 / 1.0

    # scores = (q @ k^T) * (1 / inv_scale_factor)
    # Contract the last dim of both operands -> MXU consumes k untransposed.
    inv_scale = 1.0 / scale_ref[0]                       # one scalar divide
    s = lax.dot_general(
        q, k,
        dimension_numbers=(((1,), (1,)), ((), ())),
        preferred_element_type=jnp.float32,
    ) * inv_scale                                        # (S, S)

    # Numerically stable softmax along the last axis.
    m = jnp.max(s, axis=-1, keepdims=True)               # (S, 1)
    e = jnp.exp(s - m)                                   # (S, S)
    denom = jnp.sum(e, axis=-1, keepdims=True)           # (S, 1)

    # Fuse softmax normalization with the dropout 1/(1-p) scale into one
    # per-row column scale; guard p == 1 (output is all zeros then).
    drop_p = p_ref[0]
    keep_scale = jnp.where(drop_p < 1.0, 1.0 / (1.0 - drop_p), 0.0)  # scalar
    col_scale = pl.reciprocal(denom, approx=True) * keep_scale       # (S, 1)
    probs = e * col_scale * keep                                     # (S, S)

    # output = probs @ v  (MXU)
    o_ref[0] = jnp.dot(
        probs, v, preferred_element_type=jnp.float32
    ).astype(o_ref.dtype)


@functools.partial(jax.jit)
def attention_dropout(query, key, value, inv_scale_factor, dropout_p, rng_key):
    B, S, D = query.shape
    assert B == 1, "module spec has a singleton batch dim"

    scale_arr = jnp.reshape(inv_scale_factor, (1,)).astype(jnp.float32)
    p_arr = jnp.reshape(dropout_p, (1,)).astype(jnp.float32)

    # Bernoulli keep-mask (prob 1-p), generated outside the kernel (see TODO
    # above).  Scaling by 1/(1-p) happens inside the kernel.
    p_f32 = dropout_p.astype(jnp.float32)
    keep_mask = jax.random.bernoulli(rng_key, 1.0 - p_f32, (S, S)).astype(
        jnp.float32
    )

    out = pl.pallas_call(
        attn_dropout_kernel,
        out_shape=jax.ShapeDtypeStruct((B, S, D), jnp.float32),
        in_specs=[
            pl.BlockSpec(memory_space=pltpu.MemorySpace.SMEM),  # inv_scale
            pl.BlockSpec(memory_space=pltpu.MemorySpace.SMEM),  # dropout_p
            pl.BlockSpec(memory_space=pltpu.MemorySpace.VMEM),  # query
            pl.BlockSpec(memory_space=pltpu.MemorySpace.VMEM),  # key
            pl.BlockSpec(memory_space=pltpu.MemorySpace.VMEM),  # value
            pl.BlockSpec(memory_space=pltpu.MemorySpace.VMEM),  # keep mask
        ],
        out_specs=pl.BlockSpec(memory_space=pltpu.MemorySpace.VMEM),
    )(scale_arr, p_arr, query, key, value, keep_mask)

    return out


if __name__ == "__main__":
    # Shapes from the module's sample inputs: (1, 32, 64).
    rng = jax.random.PRNGKey(0)
    kq, kk, kv, kdrop = jax.random.split(rng, 4)
    query = jax.random.normal(kq, (1, 32, 64), dtype=jnp.float32)
    key = jax.random.normal(kk, (1, 32, 64), dtype=jnp.float32)
    value = jax.random.normal(kv, (1, 32, 64), dtype=jnp.float32)

    inv_scale_factor = jnp.float32(1.0)
    dropout_p = jnp.float32(0.5)

    out = attention_dropout(query, key, value, inv_scale_factor, dropout_p, kdrop)
    out = jax.block_until_ready(out)

    assert out.shape == (1, 32, 64)
    assert bool(jnp.all(jnp.isfinite(out)))
    print("KERNEL_OK")
</pallas_src>

<mosaic_0001>
module attributes {stable_mosaic.version = 11 : i64} {
  func.func @attn_dropout_kernel(%arg0: memref<1xf32, #tpu.memory_space<smem>>, %arg1: memref<1xf32, #tpu.memory_space<smem>>, %arg2: memref<1x32x64xf32, #tpu.memory_space<vmem>>, %arg3: memref<1x32x64xf32, #tpu.memory_space<vmem>>, %arg4: memref<1x32x64xf32, #tpu.memory_space<vmem>>, %arg5: memref<32x32xf32, #tpu.memory_space<vmem>>, %arg6: memref<1x32x64xf32, #tpu.memory_space<vmem>>) attributes {dimension_semantics = [], scalar_prefetch = 0 : i64, scratch_operands = 0 : i64, tpu.core_type = #tpu.core_type<tc>} {
    %c0 = arith.constant 0 : index
    %c0_0 = arith.constant 0 : index
    %c0_1 = arith.constant 0 : index
    %0 = vector.load %arg2[%c0, %c0_0, %c0_1] : memref<1x32x64xf32, #tpu.memory_space<vmem>>, vector<1x32x64xf32>
    %1 = vector.shape_cast %0 : vector<1x32x64xf32> to vector<32x64xf32>
    %c0_2 = arith.constant 0 : index
    %c0_3 = arith.constant 0 : index
    %c0_4 = arith.constant 0 : index
    %2 = vector.load %arg3[%c0_2, %c0_3, %c0_4] : memref<1x32x64xf32, #tpu.memory_space<vmem>>, vector<1x32x64xf32>
    %3 = vector.shape_cast %2 : vector<1x32x64xf32> to vector<32x64xf32>
    %c0_5 = arith.constant 0 : index
    %c0_6 = arith.constant 0 : index
    %c0_7 = arith.constant 0 : index
    %4 = vector.load %arg4[%c0_5, %c0_6, %c0_7] : memref<1x32x64xf32, #tpu.memory_space<vmem>>, vector<1x32x64xf32>
    %5 = vector.shape_cast %4 : vector<1x32x64xf32> to vector<32x64xf32>
    %c0_8 = arith.constant 0 : index
    %c0_9 = arith.constant 0 : index
    %6 = vector.load %arg5[%c0_8, %c0_9] : memref<32x32xf32, #tpu.memory_space<vmem>>, vector<32x32xf32>
    %c0_10 = arith.constant 0 : index
    %7 = memref.load %arg0[%c0_10] : memref<1xf32, #tpu.memory_space<smem>>
    %cst = arith.constant 1.000000e+00 : f32
    %8 = arith.divf %cst, %7 : f32
    %cst_11 = arith.constant dense<0.000000e+00> : vector<32x32xf32>
    %9 = tpu.matmul %1, %3, %cst_11 {dimension_numbers = #tpu.dot_dimension_numbers<[1], [1], [0], [0], [0, 0, 1, 0], [], []>} : vector<32x64xf32>, vector<32x64xf32>, vector<32x32xf32> -> vector<32x32xf32>
    %10 = vector.broadcast %8 : f32 to vector<32x32xf32>
    %11 = arith.mulf %9, %10 : vector<32x32xf32>
    %cst_12 = arith.constant dense<0xFF800000> : vector<32xf32>
    %12 = vector.multi_reduction <maximumf>, %11, %cst_12 [1] : vector<32x32xf32> to vector<32xf32>
    %13 = vector.shape_cast %12 : vector<32xf32> to vector<32x1xf32>
    %14 = vector.broadcast %13 : vector<32x1xf32> to vector<32x32xf32>
    %15 = arith.subf %11, %14 : vector<32x32xf32>
    %16 = math.exp %15 : vector<32x32xf32>
    %cst_13 = arith.constant dense<0.000000e+00> : vector<32xf32>
    %17 = vector.multi_reduction <add>, %16, %cst_13 [1] : vector<32x32xf32> to vector<32xf32>
    %18 = vector.shape_cast %17 : vector<32xf32> to vector<32x1xf32>
    %c0_14 = arith.constant 0 : index
    %19 = memref.load %arg1[%c0_14] : memref<1xf32, #tpu.memory_space<smem>>
    %cst_15 = arith.constant 1.000000e+00 : f32
    %20 = arith.cmpf olt, %19, %cst_15 : f32
    %cst_16 = arith.constant 1.000000e+00 : f32
    %21 = arith.subf %cst_16, %19 : f32
    %cst_17 = arith.constant 1.000000e+00 : f32
    %22 = arith.divf %cst_17, %21 : f32
    %cst_18 = arith.constant 0.000000e+00 : f32
    %23 = arith.select %20, %22, %cst_18 : f32
    %24 = tpu.reciprocal %18 {approx = true} : vector<32x1xf32> -> vector<32x1xf32>
    %25 = vector.broadcast %23 : f32 to vector<32x1xf32>
    %26 = arith.mulf %24, %25 : vector<32x1xf32>
    %27 = vector.broadcast %26 : vector<32x1xf32> to vector<32x32xf32>
    %28 = arith.mulf %16, %27 : vector<32x32xf32>
    %29 = arith.mulf %28, %6 : vector<32x32xf32>
    %cst_19 = arith.constant dense<0.000000e+00> : vector<32x64xf32>
    %30 = tpu.matmul %29, %5, %cst_19 {dimension_numbers = #tpu.dot_dimension_numbers<[1], [0], [0], [1], [0, 0, 1, 1], [], []>} : vector<32x32xf32>, vector<32x64xf32>, vector<32x64xf32> -> vector<32x64xf32>
    %c0_20 = arith.constant 0 : index
    %c0_21 = arith.constant 0 : index
    %c0_22 = arith.constant 0 : index
    %31 = vector.load %arg6[%c0_20, %c0_21, %c0_22] : memref<1x32x64xf32, #tpu.memory_space<vmem>>, vector<1x32x64xf32>
    %32 = vector.shape_cast %31 : vector<1x32x64xf32> to vector<32x64xf32>
    %33 = vector.shape_cast %30 : vector<32x64xf32> to vector<1x32x64xf32>
    tpu.vector_store %arg6[%c0_20, %c0_21, %c0_22], %33 {strides = array<i32>} : memref<1x32x64xf32, #tpu.memory_space<vmem>>, vector<1x32x64xf32>,
    return
  }
}

</mosaic_0001>

<bundles_post_ra>
// kernel: attention_dropout.1
= control target key start
LH: loop header
LB: loop body
LE: loop exit
PB: predicated region body
PF: predicated region fallthrough
CT: control target
= control target key end

     0   :  { %13 = vsyncpa [#allocation5], 0  ;;  %s535_s0 = inlined_call_operand.<no memory space> [shape: f32[1], index: 0, kind: input, shape index: {}]   ;;  %s536_s1 = inlined_call_operand.<no memory space> [shape: f32[1], index: 1, kind: input, shape index: {}]   ;;  %s537_s2 = inlined_call_operand.vmem [shape: f32[1,32,64], index: 2, kind: input, shape index: {}]   ;;  %s538_s3 = inlined_call_operand.hbm [shape: f32[1,32,64], index: 3, kind: input, shape index: {}]   ;;  %s539_s4 = inlined_call_operand.hbm [shape: f32[1,32,64], index: 4, kind: input, shape index: {}]   ;;  %s540_s5 = inlined_call_operand.vmem [shape: f32[32,32], index: 5, kind: input, shape index: {}]   ;;  %s541_s6 = inlined_call_operand.hbm [shape: f32[1,32,64], index: 6, kind: output, shape index: {}]  }
   0x1   :  { %14 = vsyncpa [#allocation8], 0 }
   0x2   :  { %15 = vsyncpa [#allocation6], 0  ;;  %s26_s23 = sshll.u32 %s538_s3, 4  ;;  %s416_s24 = smov [#allocation4]   ;;  %s27_s23 = int_to_ptr.hbm [resolvable:$true] %s26_s23 }
   0x3   :  { %s28_s25 = sshll.u32 %s416_s24, 4  ;;  %s39_s28 = sshll.u32 %s539_s4, 4  ;;  %s29_s25 = int_to_ptr.vmem [resolvable:$true] %s28_s25  ;;  %s40_s28 = int_to_ptr.hbm [resolvable:$true] %s39_s28 }
   0x4   :  { %s417_s29 = smov 128   ;;  %s418_s30 = smov 8  }
   0x5   :  { %34 = dma.hbm_to_vmem [thread:$0]  %s27_s23, 512, %s29_s25, [#allocation5], %s417_s29, %s417_s29, %s418_s30  }
   0x6   :  { %s419_s7 = smov [#allocation7]  }
   0x7   :  { %s41_s8 = sshll.u32 %s419_s7, 4  ;;  %s42_s8 = int_to_ptr.vmem [resolvable:$true] %s41_s8 }
   0x8   :  { %47 = dma.hbm_to_vmem [thread:$0]  %s40_s28, 512, %s42_s8, [#allocation8], %s417_s29, %s417_s29, %s418_s30  }
   0x9   :  { %410 = dma.done.wait [#allocation5], 512  }
   0xa   :  { %411 = vsyncadd [#allocation5], 4294966784 }
   0xb   :  { %412 = dma.done.wait [#allocation8], 512  }
   0xc   :  { %413 = vsyncadd [#allocation8], 4294966784  ;;  %v75_v0 = vstv %s535_s0  ;;  %vm91_vm0 = vcmask 523264   ;;  %v65_v2 = vld [vmem:[#allocation4 + $0x18] sm:$0xff]  ;;  %v64_v4 = vld [vmem:[#allocation4 + $0x10] sm:$0xff]  ;;  %vm150_vm5 = vcmask 261120  }
   0xd   :  { %318 = vrcp.f32 %v75_v0  ;;  %289 = vmatpush.xpose.msk.msra.mxu0 %vm91_vm0, %v65_v2  ;;  %301 = vmatpush.xpose.msk.msra.mxu2 %vm91_vm0, %v65_v2  ;;  %v87_v5 = vand.u32 2147483648, %v75_v0  ;;  %vm81_vm1 = vweird.f32 %v75_v0  ;;  %v85_v7 = vand.u32 2147483647, %v75_v0  ;;  %v63_v9 = vld [vmem:[#allocation4 + $0x8] sm:$0xff]  ;;  %v62_v13 = vld [vmem:[#allocation4] sm:$0xff]  ;;  %v60_v16 = vld [vmem:[%s537_s2 + $0x10] sm:$0xff] }
   0xe   :  { %v58_v15 = vld [vmem:[%s537_s2] sm:$0xff]  ;;  %v59_v17 = vld [vmem:[%s537_s2 + $0x8] sm:$0xff]  ;;  %v61_v18 = vld [vmem:[%s537_s2 + $0x18] sm:$0xff]  ;;  %s189_s18 = ssub.f32 1.0, %s536_s1  ;;  %p188_p0 = scmp.lt.f32.partialorder %s536_s1, 1.0 }
   0xf   :  { %v88_v10 = vor.u32 1.1754944e-38, %v87_v5  ;;  %vm86_vm4 = vcmp.eq.f32.partialorder %v85_v7, 8.507059e+37  ;;  %v69_v63 = vld [vmem:[#allocation7 + $0x18] sm:$0xff]  ;;  %v66_v2 = vld [vmem:[#allocation7] sm:$0xff]  ;;  %s420_s7 = smov [#allocation9]  }
  0x10   :  { %v190_v32 = vstv %s189_s18  ;;  %305 = vmatpush.msra.mxu3 %v69_v63  ;;  %248 = vmatpush.msra.mxu1 %v69_v63  ;;  %s273_s8 = sshll.u32 %s420_s7, 4  ;;  %s274_s8 = int_to_ptr.vmem [resolvable:$true] %s273_s8 }
  0x11   :  { %290 = vmatpush.xpose.msk.msra.mxu0 %vm91_vm0, %v64_v4  ;;  %302 = vmatpush.xpose.msk.msra.mxu2 %vm91_vm0, %v64_v4  ;;  %320 = vrcp.f32 %v190_v32  ;;  %vm196_vm6 = vweird.f32 %v190_v32  ;;  %v202_v38 = vand.u32 2147483648, %v190_v32  ;;  %v200_v40 = vand.u32 2147483647, %v190_v32 }
  0x13   :  { %v319_v1 = vpop.eup %318  ;;  %v203_v45 = vor.u32 1.1754944e-38, %v202_v38  ;;  %vm201_vm9 = vcmp.eq.f32.partialorder %v200_v40, 8.507059e+37 }
  0x14   :  { %v77_v3 = vmul.f32 %v319_v1, %v75_v0  ;;  %vm82_vm2 = vweird.f32 %v319_v1  ;;  %v68_v0 = vld [vmem:[#allocation7 + $0x10] sm:$0xff] }
  0x15   :  { %vm83_vm3 = vmor %vm81_vm1, %vm82_vm2  ;;  %291 = vmatpush.xpose.msk.msra.mxu0 %vm91_vm0, %v63_v9  ;;  %303 = vmatpush.xpose.msk.msra.mxu2 %vm91_vm0, %v63_v9  ;;  %v71_v9 = vld [vmem:[%s540_s5 + $0x8] sm:$0xff] }
  0x16   :  { %v78_v6 = vsub.f32 1.0, %v77_v3  ;;  %306 = vmatpush.msra.mxu3 %v68_v0  ;;  %249 = vmatpush.msra.mxu1 %v68_v0 }
  0x17   :  { %v321_v35 = vpop.eup %320 }
  0x18   :  { %v79_v8 = vmul.f32 %v319_v1, %v78_v6  ;;  %v192_v37 = vmul.f32 %v321_v35, %v190_v32  ;;  %vm197_vm7 = vweird.f32 %v321_v35 }
  0x19   :  { %292 = vmatpush.xpose.msk.msra.mxu0 %vm91_vm0, %v62_v13  ;;  %304 = vmatpush.xpose.msk.msra.mxu2 %vm91_vm0, %v62_v13  ;;  %vm198_vm8 = vmor %vm196_vm6, %vm197_vm7 }
  0x1a   :  { %v80_v11 = vadd.f32 %v319_v1, %v79_v8  ;;  %v193_v39 = vsub.f32 1.0, %v192_v37 }
  0x1c   :  { %v84_v12 = vsel %vm83_vm3, %v319_v1, %v80_v11  ;;  %293 = vmatmul.msk.f32.vlgmr.msra.gmra.mxu0 %vm91_vm0, %v58_v15  ;;  %295 = vmatmul.msk.f32.vlgmr.msra.gmra.mxu2 %vm91_vm0, %v60_v16  ;;  %v194_v43 = vmul.f32 %v321_v35, %v193_v39  ;;  %v67_v1 = vld [vmem:[#allocation7 + $0x8] sm:$0xff]  ;;  %v72_v16 = vld [vmem:[%s540_s5 + $0x10] sm:$0xff] }
  0x1d   :  { %v89_v14 = vsel %vm86_vm4, %v88_v10, %v84_v12  ;;  %307 = vmatpush.msra.mxu3 %v67_v1  ;;  %250 = vmatpush.msra.mxu1 %v67_v1 }
  0x1e   :  { %309 = vpush %v89_v14  ;;  %v195_v48 = vadd.f32 %v321_v35, %v194_v43 }
  0x1f   :  { %308 = vmatpush.msra.mxu3 %v66_v2  ;;  %251 = vmatpush.msra.mxu1 %v66_v2 }
  0x20   :  { %v199_v51 = vsel %vm198_vm8, %v321_v35, %v195_v48 }
  0x21   :  { %v204_v53 = vsel %vm201_vm9, %v203_v45, %v199_v51 }
  0x22   :  { %311 = vpush %v204_v53 }
  0x24   :  { %294 = vmatmul.msk.f32.gmra.mxu0 %vm91_vm0, %v59_v17  ;;  %296 = vmatmul.msk.f32.gmra.mxu2 %vm91_vm0, %v61_v18 }
  0x4f   :  { %s310_s16 = spop %309 }
  0x50   :  { %v145_v21 = vstv %s310_s16 }
  0x53   :  { %s312_s21 = spop %311 }
  0x54   :  { %s543_s21 = smov (!%p188_p0, %s312_s21), 0.0 }
  0x55   :  { %v211_v4 = vstv %s543_s21 }
  0x99   :  { %v133_v19 = vpop.f32.mrf.mxu0 }
  0x9a   :  { %v146_v30 = vmul.f32 %v145_v21, %v133_v19 }
  0x9c   :  { %v151_v31 = vsel %vm150_vm5, %v146_v30, -inf }
  0x9f   :  { %v139_v20 = vpop.f32.mrf.mxu2 }
  0xa0   :  { %v148_v26 = vmul.f32 %v145_v21, %v139_v20 }
  0xa1   :  { %v136_v22 = vpop.f32.mrf.mxu0 }
  0xa2   :  { %v147_v23 = vmul.f32 %v145_v21, %v136_v22  ;;  %v157_v29 = vsel %vm150_vm5, %v148_v26, -inf  ;;  %v70_v22 = vld [vmem:[%s540_s5] sm:$0xff] }
  0xa4   :  { %v154_v24 = vsel %vm150_vm5, %v147_v23, -inf }
  0xa5   :  { %155 = vmax.xlane.f32.xlu0 %v154_v24 }
  0xa7   :  { %v142_v25 = vpop.f32.mrf.mxu2 }
  0xa8   :  { %v149_v27 = vmul.f32 %v145_v21, %v142_v25  ;;  %v73_v25 = vld [vmem:[%s540_s5 + $0x18] sm:$0xff]  ;;  %s275_s5 = sshll.u32 %s541_s6, 4  ;;  %s276_s5 = int_to_ptr.hbm [resolvable:$true] %s275_s5 }
  0xaa   :  { %v160_v28 = vsel %vm150_vm5, %v149_v27, -inf }
  0xab   :  { %161 = vmax.xlane.f32.xlu1 %v160_v28 }
  0xad   :  { %158 = vmax.xlane.f32.xlu0 %v157_v29 }
  0xb3   :  { %152 = vmax.xlane.f32.xlu1 %v151_v31 }
 0x118   :  { %v156_v33 = vpop.xlane.xlu0 %155 }
 0x119   :  { %v164_v34 = vsub.f32 %v147_v23, %v156_v33 }
 0x11b   :  { %v169_v36 = vmul.f32 1.442695, %v164_v34 }
 0x11d   :  { %322 = vpow2.f32 %v169_v36 }
 0x11e   :  { %v162_v41 = vpop.xlane.xlu1 %161 }
 0x11f   :  { %v166_v42 = vsub.f32 %v149_v27, %v162_v41 }
 0x120   :  { %v159_v44 = vpop.xlane.xlu0 %158 }
 0x121   :  { %v173_v46 = vmul.f32 1.442695, %v166_v42  ;;  %v165_v47 = vsub.f32 %v148_v26, %v159_v44 }
 0x123   :  { %v323_v49 = vpop.eup %322  ;;  %324 = vpow2.f32 %v173_v46  ;;  %v171_v50 = vmul.f32 1.442695, %v165_v47 }
 0x124   :  { %v178_v52 = vsel %vm150_vm5, %v323_v49, 0.0 }
 0x125   :  { %326 = vpow2.f32 %v171_v50  ;;  %179 = vadd.xlane.f32.xlu2 %v178_v52 }
 0x126   :  { %v153_v54 = vpop.xlane.xlu1 %152 }
 0x127   :  { %v163_v55 = vsub.f32 %v146_v30, %v153_v54 }
 0x129   :  { %v325_v56 = vpop.eup %324  ;;  %v167_v57 = vmul.f32 1.442695, %v163_v55 }
 0x12a   :  { %v184_v58 = vsel %vm150_vm5, %v325_v56, 0.0 }
 0x12b   :  { %v327_v59 = vpop.eup %326  ;;  %328 = vpow2.f32 %v167_v57  ;;  %185 = vadd.xlane.f32.xlu0 %v184_v58 }
 0x12c   :  { %v181_v60 = vsel %vm150_vm5, %v327_v59, 0.0 }
 0x12d   :  { %182 = vadd.xlane.f32.xlu2 %v181_v60 }
 0x131   :  { %v329_v61 = vpop.eup %328 }
 0x132   :  { %v175_v62 = vsel %vm150_vm5, %v329_v61, 0.0 }
 0x133   :  { %176 = vadd.xlane.f32.xlu1 %v175_v62 }
 0x198   :  { %v180_v3 = vpop.xlane.xlu2 %179 }
 0x199   :  { %330 = vrcp.f32 %v180_v3 }
 0x19e   :  { %v186_v7 = vpop.xlane.xlu0 %185 }
 0x19f   :  { %v331_v5 = vpop.eup %330 }
 0x1a0   :  { %v213_v6 = vmul.f32 %v331_v5, %v211_v4  ;;  %v183_v8 = vpop.xlane.xlu2 %182 }
 0x1a1   :  { %332 = vrcp.f32 %v183_v8 }
 0x1a2   :  { %v217_v10 = vmul.f32 %v323_v49, %v213_v6  ;;  %334 = vrcp.f32 %v186_v7 }
 0x1a4   :  { %v221_v11 = vmul.f32 %v217_v10, %v71_v9 }
 0x1a6   :  { %v177_v12 = vpop.xlane.xlu1 %176  ;;  %298 = vmatmul.msk.f32.vlgmr.msra.gmra.mxu3 %vm150_vm5, %v221_v11 }
 0x1a7   :  { %v333_v13 = vpop.eup %332  ;;  %336 = vrcp.f32 %v177_v12 }
 0x1a8   :  { %v214_v14 = vmul.f32 %v333_v13, %v211_v4  ;;  %v335_v15 = vpop.eup %334 }
 0x1a9   :  { %v215_v18 = vmul.f32 %v335_v15, %v211_v4 }
 0x1aa   :  { %v218_v17 = vmul.f32 %v327_v59, %v214_v14 }
 0x1ab   :  { %v219_v24 = vmul.f32 %v325_v56, %v215_v18 }
 0x1ac   :  { %v222_v19 = vmul.f32 %v218_v17, %v72_v16 }
 0x1ad   :  { %v337_v20 = vpop.eup %336  ;;  %v223_v27 = vmul.f32 %v219_v24, %v73_v25 }
 0x1ae   :  { %v212_v21 = vmul.f32 %v337_v20, %v211_v4  ;;  %299 = vmatmul.msk.f32.gmra.mxu3 %vm150_vm5, %v222_v19 }
 0x1b0   :  { %v216_v23 = vmul.f32 %v329_v61, %v212_v21 }
 0x1b2   :  { %v220_v26 = vmul.f32 %v216_v23, %v70_v22 }
 0x1b4   :  { %297 = vmatmul.msk.f32.vlgmr.msra.gmra.mxu1 %vm150_vm5, %v220_v26 }
 0x1b6   :  { %300 = vmatmul.msk.f32.gmra.mxu3 %vm150_vm5, %v223_v27 }
 0x229   :  { %v256_v28 = vpop.f32.mrf.mxu3 }
 0x22a   :  { %266 = vst.msk [vmem:[#allocation9 + $0x8] sm:$0xff] %vm91_vm0, %v256_v28 }
 0x231   :  { %v253_v29 = vpop.f32.mrf.mxu1  ;;  %v259_v30 = vpop.f32.mrf.mxu3 }
 0x232   :  { %265 = vst.msk [vmem:[#allocation9] sm:$0xff] %vm91_vm0, %v253_v29 }
 0x233   :  { %267 = vst.msk [vmem:[#allocation9 + $0x10] sm:$0xff] %vm91_vm0, %v259_v30 }
 0x239   :  { %v262_v31 = vpop.f32.mrf.mxu3 }
 0x23a   :  { %268 = vst.msk [vmem:[#allocation9 + $0x18] sm:$0xff] %vm91_vm0, %v262_v31 }
 0x23b   :  { %281 = dma.vmem_to_hbm [thread:$0]  %s274_s8, 512, %s276_s5, [#allocation6], %s417_s29, %s417_s29, %s418_s30  }
 0x23c   :  { %414 = dma.done.wait [#allocation6], 512  }
 0x23d   :  { %415 = vsyncadd [#allocation6], 4294966784 }
 0x23e   :  { %286 = vsyncpa [#allocation5], 1 }
 0x23f   :  { %287 = vsyncpa [#allocation8], 1 }
 0x240   :  { %288 = vsyncpa [#allocation6], 1 }

</bundles_post_ra>
